<compile_context>
chip_gen: v7x
topology: tpu7x:2x2x1
jax: 0.10.0
libtpu: 0.0.40
codegen_flags: <defaults>
</compile_context>

<pallas_src>
import functools

import jax
import jax.numpy as jnp
from jax import lax
from jax.experimental import pallas as pl
from jax.experimental.pallas import tpu as pltpu


def _tv_kernel(x_ref, o_ref, *, H, W, N, block_n, c_h, c_v, mask_rows):
    """One grid step: TV partial sum over a lane-dense (block_n, H*W) tile."""
    HW = H * W
    i = pl.program_id(0)

    x = x_ref[...].astype(jnp.float32)                        # (block_n, HW)

    # Intra-image flat position of every element.
    pos = lax.broadcasted_iota(jnp.int32, (block_n, HW), 1)
    # Valid-diff masks (no wrap across image rows / image boundary).
    w_ok = (pos % W) < (W - 1)          # has a right neighbour in the same row
    h_ok = pos < (H - 1) * W            # has a neighbour one image-row below
    if mask_rows:
        # Ragged last block: rows >= N hold garbage (no bounds checks on TPU).
        row = lax.broadcasted_iota(jnp.int32, (block_n, HW), 0)
        row_ok = (i * block_n + row) < N
        w_ok = jnp.logical_and(w_ok, row_ok)
        h_ok = jnp.logical_and(h_ok, row_ok)

    # Neighbour fetch via XLU rotation (no relayouted slice copies).
    # roll(x, HW-1)[p] == x[(p+1) % HW];  roll(x, HW-W)[p] == x[(p+W) % HW].
    nb_w = pltpu.roll(x, HW - 1, axis=1)
    nb_h = pltpu.roll(x, HW - W, axis=1)

    tv_h = jnp.sum(jnp.where(w_ok, jnp.abs(nb_w - x), 0.0))
    tv_v = jnp.sum(jnp.where(h_ok, jnp.abs(nb_h - x), 0.0))
    partial = tv_h * c_h + tv_v * c_v

    # Write the per-block scalar partial into slot [0, 0] of its own
    # (8,128)-aligned output block (unmasked full-tile store).
    r8 = lax.broadcasted_iota(jnp.int32, (8, 128), 0)
    c128 = lax.broadcasted_iota(jnp.int32, (8, 128), 1)
    first = jnp.logical_and(r8 == 0, c128 == 0)
    o_ref[...] = jnp.where(first, partial, 0.0)


def tv_loss(x, *, reduction="sum", alpha=1e-4, block_n=None):
    """TVLoss forward: total_variation(x, reduction) * alpha. x: (B, C, H, W)."""
    B, C, H, W = x.shape
    N = B * C
    HW = H * W

    # Keep the original dtype (no HBM-doubling up-cast); lane-dense layout.
    xf = x.reshape(N, HW)

    # ~4 MiB of f32 working set per block (input block is <= that in bytes).
    if block_n is None:
        block_n = max(1, (4 * 1024 * 1024) // max(1, HW * 4))
    block_n = max(1, min(int(block_n), N))
    if block_n < N:
        # Respect the (8, 128) tiling constraint on the block's sublane dim.
        block_n = min(N, max(8, (block_n // 8) * 8))

    n_blocks = pl.cdiv(N, block_n)
    mask_rows = (n_blocks * block_n) != N

    # Per-term scales (PyTorch 'mean' divides each term by its own count).
    if reduction == "mean":
        cnt_h = N * H * (W - 1)
        cnt_v = N * (H - 1) * W
        scale_h = (1.0 / cnt_h) if cnt_h > 0 else float("nan")
        scale_v = (1.0 / cnt_v) if cnt_v > 0 else float("nan")
    else:  # 'sum' (module default)
        scale_h = scale_v = 1.0
    c_h = float(alpha) * scale_h
    c_v = float(alpha) * scale_v

    kernel = functools.partial(
        _tv_kernel, H=H, W=W, N=N, block_n=block_n,
        c_h=c_h, c_v=c_v, mask_rows=mask_rows,
    )

    partials = pl.pallas_call(
        kernel,
        out_shape=jax.ShapeDtypeStruct((n_blocks * 8, 128), jnp.float32),
        grid_spec=pltpu.PrefetchScalarGridSpec(
            num_scalar_prefetch=0,
            grid=(n_blocks,),
            in_specs=[pl.BlockSpec((block_n, HW), lambda i: (i, 0))],
            out_specs=pl.BlockSpec((8, 128), lambda i: (i, 0)),
        ),
        compiler_params=pltpu.CompilerParams(
            dimension_semantics=("parallel",),        # both TCs on v7x
            vmem_limit_bytes=48 * 1024 * 1024,        # safe on v5e/v6e/v7x
        ),
    )(xf)

    return jnp.sum(partials)


def _tv_loss_reference(x, reduction="sum", alpha=1e-4):
    """Pure-JAX reference mirroring the PyTorch total_variation()."""
    x = x.astype(jnp.float32)
    tv_h = jnp.abs(x[:, :, :, 1:] - x[:, :, :, :-1])
    tv_v = jnp.abs(x[:, :, 1:, :] - x[:, :, :-1, :])
    if reduction == "mean":
        tv = jnp.mean(tv_h) + jnp.mean(tv_v)
    else:
        tv = jnp.sum(tv_h) + jnp.sum(tv_v)
    return tv * alpha


if __name__ == "__main__":
    key = jax.random.PRNGKey(0)
    B, C, H, W = 2, 4, 16, 16
    x = jax.random.normal(key, (B, C, H, W), dtype=jnp.float32)

    # Module defaults: reduction='sum', alpha=1e-4 (single block, full dim).
    loss = jax.block_until_ready(tv_loss(x, reduction="sum", alpha=1e-4))
    ref = _tv_loss_reference(x, reduction="sum", alpha=1e-4)
    assert jnp.allclose(loss, ref, rtol=1e-5, atol=1e-6), (loss, ref)

    # 'mean' reduction path.
    loss_m = jax.block_until_ready(tv_loss(x, reduction="mean", alpha=1e-4))
    ref_m = _tv_loss_reference(x, reduction="mean", alpha=1e-4)
    assert jnp.allclose(loss_m, ref_m, rtol=1e-5, atol=1e-8), (loss_m, ref_m)

    # bf16 input: streamed at 2 B/elem, cast to f32 only in VMEM.
    x_bf = x.astype(jnp.bfloat16)
    loss_bf = jax.block_until_ready(tv_loss(x_bf, reduction="sum", alpha=1e-4))
    ref_bf = _tv_loss_reference(x_bf, reduction="sum", alpha=1e-4)
    assert jnp.allclose(loss_bf, ref_bf, rtol=1e-4, atol=1e-6), (loss_bf, ref_bf)

    # Multi-block + ragged last block (N=15, block_n=8): exercises the
    # in-kernel row mask and the parallel per-block partial outputs.
    key2 = jax.random.PRNGKey(0)
    x2 = jax.random.normal(key2, (5, 3, 16, 16), dtype=jnp.float32)
    loss2 = jax.block_until_ready(tv_loss(x2, reduction="sum", alpha=1e-4, block_n=8))
    ref2 = _tv_loss_reference(x2, reduction="sum", alpha=1e-4)
    assert jnp.allclose(loss2, ref2, rtol=1e-5, atol=1e-6), (loss2, ref2)

    print("KERNEL_OK")
</pallas_src>

<mosaic_0001>
module attributes {stable_mosaic.version = 11 : i64} {
  func.func @_tv_kernel(%arg0: i32, %arg1: memref<8x256xf32, #tpu.memory_space<vmem>>, %arg2: memref<8x128xf32, #tpu.memory_space<vmem>>) attributes {dimension_semantics = [#tpu.dimension_semantics<parallel>], iteration_bounds = array<i64: 1>, scalar_prefetch = 0 : i64, scratch_operands = 0 : i64, tpu.core_type = #tpu.core_type<tc>, window_params = [{transform_indices = @transform_0, window_bounds = array<i64: 8, 256>}, {transform_indices = @transform_1, window_bounds = array<i64: 8, 128>}]} {
    %c0 = arith.constant 0 : index
    %c0_0 = arith.constant 0 : index
    %0 = vector.load %arg1[%c0, %c0_0] : memref<8x256xf32, #tpu.memory_space<vmem>>, vector<8x256xf32>
    %1 = tpu.iota {dimensions = array<i32: 1>} : vector<8x256xi32>
    %c16_i32 = arith.constant 16 : i32
    %c0_i32 = arith.constant 0 : i32
    %2 = arith.cmpi eq, %c16_i32, %c0_i32 : i32
    %c1_i32 = arith.constant 1 : i32
    %3 = arith.select %2, %c1_i32, %c16_i32 : i32
    %4 = vector.broadcast %3 : i32 to vector<8x256xi32>
    %5 = arith.remsi %1, %4 : vector<8x256xi32>
    %c0_i32_1 = arith.constant 0 : i32
    %6 = vector.broadcast %c0_i32_1 : i32 to vector<8x256xi32>
    %7 = arith.cmpi ne, %5, %6 : vector<8x256xi32>
    %c0_i32_2 = arith.constant 0 : i32
    %8 = vector.broadcast %c0_i32_2 : i32 to vector<8x256xi32>
    %9 = arith.cmpi slt, %5, %8 : vector<8x256xi32>
    %c0_i32_3 = arith.constant 0 : i32
    %10 = arith.cmpi slt, %3, %c0_i32_3 : i32
    %11 = vector.broadcast %10 : i1 to vector<8x256xi1>
    %12 = vector.broadcast %11 : vector<8x256xi1> to vector<8x256xi1>
    %13 = arith.xori %9, %12 : vector<8x256xi1>
    %14 = arith.andi %13, %7 : vector<8x256xi1>
    %15 = vector.broadcast %3 : i32 to vector<8x256xi32>
    %16 = arith.addi %5, %15 : vector<8x256xi32>
    %17 = arith.select %14, %16, %5 : vector<8x256xi1>, vector<8x256xi32>
    %c15_i32 = arith.constant 15 : i32
    %18 = vector.broadcast %c15_i32 : i32 to vector<8x256xi32>
    %19 = arith.cmpi slt, %17, %18 : vector<8x256xi32>
    %c240_i32 = arith.constant 240 : i32
    %20 = vector.broadcast %c240_i32 : i32 to vector<8x256xi32>
    %21 = arith.cmpi slt, %1, %20 : vector<8x256xi32>
    %c255_i32 = arith.constant 255 : i32
    %22 = tpu.dynamic_rotate %0 by %c255_i32 dim 1 : vector<8x256xf32>, i32 -> vector<8x256xf32>
    %c240_i32_4 = arith.constant 240 : i32
    %23 = tpu.dynamic_rotate %0 by %c240_i32_4 dim 1 : vector<8x256xf32>, i32 -> vector<8x256xf32>
    %24 = arith.subf %22, %0 : vector<8x256xf32>
    %25 = math.absf %24 : vector<8x256xf32>
    %cst = arith.constant 0.000000e+00 : f32
    %26 = vector.broadcast %cst : f32 to vector<8x256xf32>
    %27 = arith.select %19, %25, %26 : vector<8x256xi1>, vector<8x256xf32>
    %28 = vector.shape_cast %27 : vector<8x256xf32> to vector<1x8x256xf32>
    %cst_5 = arith.constant dense<0.000000e+00> : vector<1xf32>
    %29 = vector.multi_reduction <add>, %28, %cst_5 [1, 2] : vector<1x8x256xf32> to vector<1xf32>
    %30 = vector.shape_cast %29 : vector<1xf32> to vector<1x1x1xf32>
    %31 = vector.extract %30[0, 0, 0] : f32 from vector<1x1x1xf32>
    %32 = arith.subf %23, %0 : vector<8x256xf32>
    %33 = math.absf %32 : vector<8x256xf32>
    %cst_6 = arith.constant 0.000000e+00 : f32
    %34 = vector.broadcast %cst_6 : f32 to vector<8x256xf32>
    %35 = arith.select %21, %33, %34 : vector<8x256xi1>, vector<8x256xf32>
    %36 = vector.shape_cast %35 : vector<8x256xf32> to vector<1x8x256xf32>
    %cst_7 = arith.constant dense<0.000000e+00> : vector<1xf32>
    %37 = vector.multi_reduction <add>, %36, %cst_7 [1, 2] : vector<1x8x256xf32> to vector<1xf32>
    %38 = vector.shape_cast %37 : vector<1xf32> to vector<1x1x1xf32>
    %39 = vector.extract %38[0, 0, 0] : f32 from vector<1x1x1xf32>
    %cst_8 = arith.constant 9.99999974E-5 : f32
    %40 = arith.mulf %31, %cst_8 : f32
    %cst_9 = arith.constant 9.99999974E-5 : f32
    %41 = arith.mulf %39, %cst_9 : f32
    %42 = arith.addf %40, %41 : f32
    %43 = tpu.iota {dimensions = array<i32: 0>} : vector<8x128xi32>
    %44 = tpu.iota {dimensions = array<i32: 1>} : vector<8x128xi32>
    %c0_i32_10 = arith.constant 0 : i32
    %45 = vector.broadcast %c0_i32_10 : i32 to vector<8x128xi32>
    %46 = arith.cmpi eq, %43, %45 : vector<8x128xi32>
    %c0_i32_11 = arith.constant 0 : i32
    %47 = vector.broadcast %c0_i32_11 : i32 to vector<8x128xi32>
    %48 = arith.cmpi eq, %44, %47 : vector<8x128xi32>
    %49 = arith.andi %46, %48 : vector<8x128xi1>
    %cst_12 = arith.constant 0.000000e+00 : f32
    %50 = vector.broadcast %42 : f32 to vector<8x128xf32>
    %51 = vector.broadcast %cst_12 : f32 to vector<8x128xf32>
    %52 = arith.select %49, %50, %51 : vector<8x128xi1>, vector<8x128xf32>
    %c0_13 = arith.constant 0 : index
    %c0_14 = arith.constant 0 : index
    %53 = vector.load %arg2[%c0_13, %c0_14] : memref<8x128xf32, #tpu.memory_space<vmem>>, vector<8x128xf32>
    tpu.vector_store %arg2[%c0_13, %c0_14], %52 {strides = array<i32>} : memref<8x128xf32, #tpu.memory_space<vmem>>, vector<8x128xf32>,
    return
  }
  func.func @transform_0(%arg0: i32) -> (i32, i32) {
    %c0_i32 = arith.constant 0 : i32
    %c0_i32_0 = arith.constant 0 : i32
    return %arg0, %c0_i32 : i32, i32
  }
  func.func @transform_1(%arg0: i32) -> (i32, i32) {
    %c0_i32 = arith.constant 0 : i32
    %c0_i32_0 = arith.constant 0 : i32
    return %arg0, %c0_i32 : i32, i32
  }
}

</mosaic_0001>

<bundles_post_ra>
// kernel: tpu_custom_call.1
= control target key start
LH: loop header
LB: loop body
LE: loop exit
PB: predicated region body
PF: predicated region fallthrough
CT: control target
= control target key end

     0   :  { %6 = vsyncpa [#allocation3], 0  ;;  %s220_s0 = inlined_call_operand.hbm [shape: f32[8,256], index: 0, kind: input, shape index: {}]   ;;  %s221_s1 = inlined_call_operand.hbm [shape: f32[8,128], index: 1, kind: output, shape index: {}]  }
   0x1   :  { %7 = vsyncpa [#allocation4], 0  ;;  %s182_s6 = smov [#allocation2]   ;;  %s134_s10 = scalar_lea.hbm %s220_s0, 256 }
   0x2   :  { %s14_s7 = sshll.u32 %s182_s6, 4  ;;  %p135_p0 = scmp.ne.s32.totalorder %s220_s0, %s134_s10  ;;  %s15_s7 = int_to_ptr.vmem [resolvable:$true] %s14_s7 }
   0x3   :  { %p138_p1 = scmp.lt.u32.totalorder %s134_s10, %s220_s0 }
   0x5   :  { %p140_p2 = pnand %p138_p1, %p135_p0 }
   0x7   :  { %143 = shalt.err (!%p140_p2)
}
   0x8   :  { %s144_s15 = scalar_lea.vmem %s15_s7, 256  ;;  %p149_p4 = scmp.lt.s32.totalorder %s15_s7, %s15_s7 }
   0x9   :  { %p145_p3 = scmp.ne.s32.totalorder %s15_s7, %s144_s15  ;;  %p150_p5 = scmp.lt.s32.totalorder %s144_s15, %s144_s15 }
   0xb   :  { %p151_p6 = por %p150_p5, %p149_p4 }
   0xd   :  { %p152_p7 = pnand %p151_p6, %p145_p3 }
   0xf   :  { %155 = shalt.err (!%p152_p7)
}
  0x10   :  { %17 = dma.hbm_to_vmem [thread:$0]  %s220_s0, 256, %s15_s7, [#allocation3]  }
  0x11   :  { %178 = dma.done.wait [#allocation3], 256  }
  0x12   :  { %179 = vsyncadd [#allocation3], 4294967040  ;;  %v21_v0 = vld [vmem:[#allocation2] sm:$0xff]  ;;  %s183_s18 = smov 112   ;;  %s184_s19 = smov 127   ;;  %v22_v1 = vld [vmem:[#allocation2 + $0x8] sm:$0xff]  ;;  %v23_v2 = vlaneseq }
  0x13   :  { %61 = vrot.lane.b32.xlu1 %v21_v0, %s183_s18  ;;  %54 = vrot.lane.b32.xlu0 %v21_v0, %s184_s19  ;;  %s185_s23 = smov [#allocation5]  }
  0x14   :  { %v24_v3 = vand.u32 127, %v23_v2  ;;  %v104_v42 = vshrl.u32 %v23_v2, 7  ;;  %s117_s24 = sshll.u32 %s185_s23, 4  ;;  %s118_s24 = int_to_ptr.vmem [resolvable:$true] %s117_s24 }
  0x15   :  { %s156_s26 = scalar_lea.vmem %s118_s24, 128  ;;  %p161_p9 = scmp.lt.s32.totalorder %s118_s24, %s118_s24 }
  0x16   :  { %v25_v4 = vadd.s32 128, %v24_v3  ;;  %vm65_vm0 = vcmp.lt.s32.totalorder %v24_v3, 112  ;;  %vm58_vm1 = vcmp.lt.s32.totalorder %v24_v3, 127  ;;  %v30_v7 = vand.u32 15, %v24_v3  ;;  %p157_p8 = scmp.ne.s32.totalorder %s118_s24, %s156_s26  ;;  %p162_p10 = scmp.lt.s32.totalorder %s156_s26, %s156_s26 }
  0x17   :  { %63 = vrot.lane.b32.xlu1 %v22_v1, %s183_s18  ;;  %56 = vrot.lane.b32.xlu0 %v22_v1, %s184_s19  ;;  %vm105_vm5 = vcmp.eq.s32.totalorder %v104_v42, 0  ;;  %vm106_vm6 = vcmp.eq.s32.totalorder %v24_v3, 0 }
  0x18   :  { %v37_v8 = vand.u32 15, %v25_v4  ;;  %vm53_vm2 = vcmp.lt.s32.totalorder %v25_v4, 240  ;;  %vm50_vm3 = vcmp.lt.s32.totalorder %v30_v7, 15  ;;  %vm107_vm7 = vmand %vm105_vm5, %vm106_vm6  ;;  %p163_p11 = por %p162_p10, %p161_p9 }
  0x1a   :  { %vm51_vm4 = vcmp.lt.s32.totalorder %v37_v8, 15  ;;  %p164_p12 = pnand %p163_p11, %p157_p8 }
  0x85   :  { %v62_v5 = vpop.permute.xlu1 %61  ;;  %v55_v6 = vpop.permute.xlu0 %54 }
  0x89   :  { %v64_v9 = vpop.permute.xlu1 %63  ;;  %v57_v10 = vpop.permute.xlu0 %56 }
  0x8a   :  { %v66_v11 = vsel %vm65_vm0, %v62_v5, %v64_v9  ;;  %v67_v12 = vsel %vm65_vm0, %v64_v9, %v62_v5  ;;  %v59_v13 = vsel %vm58_vm1, %v55_v6, %v57_v10  ;;  %v60_v14 = vsel %vm58_vm1, %v57_v10, %v55_v6 }
  0x8b   :  { %v84_v15 = vsub.f32 %v66_v11, %v21_v0  ;;  %v85_v16 = vsub.f32 %v67_v12, %v22_v1  ;;  %v68_v17 = vsub.f32 %v59_v13, %v21_v0  ;;  %v69_v18 = vsub.f32 %v60_v14, %v22_v1 }
  0x8d   :  { %v86_v19 = vand.u32 2147483647, %v84_v15  ;;  %v87_v20 = vand.u32 2147483647, %v85_v16  ;;  %v70_v21 = vand.u32 2147483647, %v68_v17 }
  0x8e   :  { %v71_v22 = vand.u32 2147483647, %v69_v18 }
  0x8f   :  { %v89_v23 = vsel %vm53_vm2, %v87_v20, 0.0  ;;  %v72_v24 = vsel %vm50_vm3, %v70_v21, 0.0 }
  0x90   :  { %v90_v25 = vadd.f32 %v89_v23, %v86_v19  ;;  %v73_v26 = vsel %vm51_vm4, %v71_v22, 0.0 }
  0x91   :  { %v74_v27 = vadd.f32 %v73_v26, %v72_v24 }
  0x92   :  { %91 = vadd.xlane.f32.xlu1 %v90_v25 }
  0x93   :  { %75 = vadd.xlane.f32.xlu0 %v74_v27 }
 0x11f   :  { %v92_v28 = vpop.xlane.xlu1 %91 }
 0x120   :  { %v93_v29 = vrot.slane %v92_v28, 4  ;;  %v76_v30 = vpop.xlane.xlu0 %75 }
 0x121   :  { %v77_v31 = vrot.slane %v76_v30, 4 }
 0x122   :  { %v94_v32 = vadd.f32 %v93_v29, %v92_v28 }
 0x123   :  { %v78_v33 = vadd.f32 %v77_v31, %v76_v30 }
 0x124   :  { %v95_v34 = vrot.slane %v94_v32, 2 }
 0x125   :  { %v79_v35 = vrot.slane %v78_v33, 2 }
 0x126   :  { %v96_v36 = vadd.f32 %v95_v34, %v94_v32 }
 0x127   :  { %v80_v37 = vadd.f32 %v79_v35, %v78_v33 }
 0x128   :  { %v97_v38 = vrot.slane %v96_v36, 1 }
 0x129   :  { %v81_v39 = vrot.slane %v80_v37, 1 }
 0x12a   :  { %v98_v40 = vadd.f32 %v97_v38, %v96_v36 }
 0x12b   :  { %v82_v41 = vadd.f32 %v81_v39, %v80_v37 }
 0x12d   :  { %126 = vpush %v82_v41 }
 0x12e   :  { %128 = vpush %v98_v40 }
 0x15e   :  { %s127_s0 = spop %126 }
 0x15f   :  { %s100_s20 = smul.f32 0.0001, %s127_s0  ;;  %s129_s21 = spop %128 }
 0x160   :  { %s101_s22 = smul.f32 0.0001, %s129_s21 }
 0x162   :  { %s102_s25 = sadd.f32 %s101_s22, %s100_s20 }
 0x164   :  { %v108_v43 = vstv %s102_s25 }
 0x165   :  { %v109_v44 = vsel %vm107_vm7, %v108_v43, 0.0 }
 0x166   :  { %110 = vst [vmem:[#allocation5] sm:$0xff] %v109_v44 }
 0x167   :  { %167 = shalt.err (!%p164_p12)
}
 0x168   :  { %s168_s29 = scalar_lea.hbm %s221_s1, 128 }
 0x169   :  { %p169_p13 = scmp.ne.s32.totalorder %s221_s1, %s168_s29  ;;  %p172_p0 = scmp.lt.u32.totalorder %s168_s29, %s221_s1 }
 0x16b   :  { %p174_p1 = pnand %p172_p0, %p169_p13 }
 0x16d   :  { %177 = shalt.err (!%p174_p1)
}
 0x16e   :  { %120 = dma.vmem_to_hbm [thread:$0]  %s118_s24, 128, %s221_s1, [#allocation4]  }
 0x16f   :  { %180 = dma.done.wait [#allocation4], 128  }
 0x170   :  { %181 = vsyncadd [#allocation4], 4294967168 }
 0x171   :  { %124 = vsyncpa [#allocation3], 1 }
 0x172   :  { %125 = vsyncpa [#allocation4], 1 }

</bundles_post_ra>
